<compile_context>
chip_gen: v7x
topology: tpu7x:2x2x1
jax: 0.10.0
libtpu: 0.0.40
codegen_flags: <defaults>
</compile_context>

<pallas_src>
import jax
import jax.numpy as jnp
from jax import lax
from jax.experimental import pallas as pl
from jax.experimental.pallas import tpu as pltpu

NUM_GROUPS = 32
EPS = 1e-6


# --------------------------------------------------------------------------------------
# Pass 1a: GroupNorm statistics (per-channel mean / inv_std, constant within each group)
# --------------------------------------------------------------------------------------
def _stats_kernel(x_ref, member_ref, member_t_ref, stats_ref, csum_ref, csq_ref):
    t = pl.program_id(1)
    x = x_ref[0]                                        # (block_n, C) f32
    block_n, C = x.shape

    tsum = jnp.sum(x, axis=0, keepdims=True)            # (1, C)
    tsq = jnp.sum(x * x, axis=0, keepdims=True)          # (1, C)

    @pl.when(t == 0)
    def _():
        csum_ref[...] = tsum
        csq_ref[...] = tsq

    @pl.when(t > 0)
    def _():
        csum_ref[...] = csum_ref[...] + tsum
        csq_ref[...] = csq_ref[...] + tsq

    @pl.when(t == pl.num_programs(1) - 1)
    def _():
        cg = C // NUM_GROUPS
        count = jnp.float32(block_n * pl.num_programs(1) * cg)
        stacked = jnp.concatenate([csum_ref[...], csq_ref[...]], axis=0)   # (2, C)
        # channel sums -> group means of x and x^2 (one small MXU dot), then broadcast back
        gstats = jnp.dot(stacked, member_ref[...],
                         preferred_element_type=jnp.float32) / count        # (2, G)
        back = jnp.dot(gstats, member_t_ref[...],
                       preferred_element_type=jnp.float32)                   # (2, C)
        mean = back[0:1, :]
        var = jnp.maximum(back[1:2, :] - mean * mean, 0.0)   # clamp: single-pass formula guard
        inv_std = lax.rsqrt(var + EPS)
        stats_ref[0] = jnp.concatenate([mean, inv_std], axis=0)             # (2, C)


# --------------------------------------------------------------------------------------
# Pass 1b: apply GroupNorm + QKV projection (column-split to bound fp32 temporaries)
# --------------------------------------------------------------------------------------
def _norm_qkv_kernel(x_ref, stats_ref, gamma_ref, beta_ref,
                     wq_ref, wk_ref, wv_ref, bqkv_ref,
                     q_ref, k_ref, v_ref):
    x = x_ref[0]                                        # (block_n, C) f32
    C = x.shape[-1]
    scale = float(C) ** -0.5                            # folded into q here

    st = stats_ref[0]                                   # (2, C)
    mean = st[0:1, :]
    inv_std = st[1:2, :]

    h = (x - mean) * inv_std
    h = h * gamma_ref[...] + beta_ref[...]              # (block_n, C) f32
    h16 = h.astype(jnp.bfloat16)

    b = bqkv_ref[...]                                   # (3, C) f32
    q = jnp.dot(h16, wq_ref[...], preferred_element_type=jnp.float32) + b[0:1, :]
    q_ref[0] = (q * scale).astype(jnp.bfloat16)
    k = jnp.dot(h16, wk_ref[...], preferred_element_type=jnp.float32) + b[1:2, :]
    k_ref[0] = k.astype(jnp.bfloat16)
    v = jnp.dot(h16, wv_ref[...], preferred_element_type=jnp.float32) + b[2:3, :]
    v_ref[0] = v.astype(jnp.bfloat16)


# --------------------------------------------------------------------------------------
# Pass 2: flash-style attention + output projection + residual
# (INVARIANT: the kv grid axis must be the innermost, "arbitrary" axis — the output block is
#  resident across it and only written on the last kv step.)
# --------------------------------------------------------------------------------------
def _attn_kernel(x_ref, q_ref, k_ref, v_ref, wp_ref, bp_ref, o_ref,
                 m_ref, l_ref, acc_ref):
    ki = pl.program_id(2)

    q = q_ref[0]                                        # (block_q, C)  bf16 (pre-scaled)
    k = k_ref[0]                                        # (block_kv, C) bf16
    v = v_ref[0]                                        # (block_kv, C) bf16

    # scores: contract the C axis of both operands directly (no XLU transpose of k)
    s = lax.dot_general(q, k, dimension_numbers=(((1,), (1,)), ((), ())),
                        preferred_element_type=jnp.float32)               # (bq, bkv) f32
    m_tile = jnp.max(s, axis=-1, keepdims=True)

    @pl.when(ki == 0)
    def _():
        # first kv tile: initialize directly (skip the alpha = exp(-inf) rescale work)
        p = jnp.exp(s - m_tile)
        m_ref[...] = m_tile
        l_ref[...] = jnp.sum(p, axis=-1, keepdims=True)
        acc_ref[...] = jnp.dot(p.astype(jnp.bfloat16), v,
                               preferred_element_type=jnp.float32)

    @pl.when(ki > 0)
    def _():
        m_prev = m_ref[...]
        m_new = jnp.maximum(m_prev, m_tile)
        alpha = jnp.exp(m_prev - m_new)
        p = jnp.exp(s - m_new)
        l_ref[...] = alpha * l_ref[...] + jnp.sum(p, axis=-1, keepdims=True)
        acc_ref[...] = alpha * acc_ref[...] + jnp.dot(
            p.astype(jnp.bfloat16), v, preferred_element_type=jnp.float32)
        m_ref[...] = m_new

    @pl.when(ki == pl.num_programs(2) - 1)
    def _():
        # deferred normalization: one reciprocal over (bq, 1) instead of dividing (bq, bkv)
        attn = acc_ref[...] * pl.reciprocal(l_ref[...], approx=False)       # (bq, C) f32
        proj = jnp.dot(attn.astype(jnp.bfloat16), wp_ref[...],
                       preferred_element_type=jnp.float32) + bp_ref[...]
        o_ref[0] = x_ref[0] + proj                                          # residual


# --------------------------------------------------------------------------------------
# Wrapper
# --------------------------------------------------------------------------------------
def spatial_self_attention(x_nchw, params, *, block_q=None, block_kv=None, block_n=None):
    """x_nchw: (B, C, H, W) float32.  Returns (B, C, H, W) float32."""
    gamma, beta, wq, bq, wk, bk, wv, bv, wp, bp = params
    B, C, H, W = x_nchw.shape
    N = H * W
    G = NUM_GROUPS
    assert C % G == 0, "GroupNorm(32) requires channels % 32 == 0"
    cg = C // G

    def _pick(target):
        # largest divisor of N that is <= target and sublane-friendly (mult of 8, or == N)
        target = min(target, N)
        for d in range(target, 0, -1):
            if N % d == 0 and (d % 8 == 0 or d == N):
                return d
        return N

    block_n = _pick(512) if block_n is None else block_n
    block_q = _pick(512) if block_q is None else block_q     # raised from 256 (HBM-bound fix)
    block_kv = _pick(512) if block_kv is None else block_kv
    assert N % block_n == 0 and N % block_q == 0 and N % block_kv == 0

    # NCHW -> (B, N, C): channels on the lane axis (plain-JAX glue, see TODO above)
    x_bnc = jnp.transpose(x_nchw, (0, 2, 3, 1)).reshape(B, N, C)

    # one-hot group membership (C, G) and its transpose (for the group mean dots)
    member = (jnp.arange(C)[:, None] // cg == jnp.arange(G)[None, :]).astype(jnp.float32)
    member_t = member.T

    wq16 = wq.astype(jnp.bfloat16)
    wk16 = wk.astype(jnp.bfloat16)
    wv16 = wv.astype(jnp.bfloat16)
    wp16 = wp.astype(jnp.bfloat16)
    bqkv = jnp.concatenate([bq, bk, bv], axis=0)              # (3, C) f32

    f32, bf16 = 4, 2

    def _vmem_limit(block_bytes):
        # double-buffered blocks + headroom for in-kernel temps; clamp to v7x physical 64 MiB
        return int(min(max(2 * block_bytes + (8 << 20), 32 << 20), 64 << 20))

    nt = N // block_n

    # ---------------- pass 1a: GroupNorm statistics ----------------
    stats = pl.pallas_call(
        _stats_kernel,
        out_shape=jax.ShapeDtypeStruct((B, 2, C), jnp.float32),
        grid=(B, nt),
        in_specs=[
            pl.BlockSpec((1, block_n, C), lambda b, t: (b, t, 0)),   # x tile
            pl.BlockSpec((C, G), lambda b, t: (0, 0)),               # member
            pl.BlockSpec((G, C), lambda b, t: (0, 0)),               # member^T
        ],
        out_specs=pl.BlockSpec((1, 2, C), lambda b, t: (b, 0, 0)),
        scratch_shapes=[pltpu.VMEM((1, C), jnp.float32),             # channel sum
                        pltpu.VMEM((1, C), jnp.float32)],            # channel sum of squares
        compiler_params=pltpu.CompilerParams(
            dimension_semantics=("parallel", "arbitrary"),
            vmem_limit_bytes=_vmem_limit(
                block_n * C * f32 + 2 * C * G * f32 + 6 * C * f32)),
    )(x_bnc, member, member_t)

    # ---------------- pass 1b: normalize + QKV projection ----------------
    q, k, v = pl.pallas_call(
        _norm_qkv_kernel,
        out_shape=[jax.ShapeDtypeStruct((B, N, C), jnp.bfloat16)] * 3,
        grid=(B, nt),
        in_specs=[
            pl.BlockSpec((1, block_n, C), lambda b, t: (b, t, 0)),   # x tile
            pl.BlockSpec((1, 2, C), lambda b, t: (b, 0, 0)),         # mean / inv_std
            pl.BlockSpec((1, C), lambda b, t: (0, 0)),               # gamma
            pl.BlockSpec((1, C), lambda b, t: (0, 0)),               # beta
            pl.BlockSpec((C, C), lambda b, t: (0, 0)),               # wq (bf16)
            pl.BlockSpec((C, C), lambda b, t: (0, 0)),               # wk (bf16)
            pl.BlockSpec((C, C), lambda b, t: (0, 0)),               # wv (bf16)
            pl.BlockSpec((3, C), lambda b, t: (0, 0)),               # bq/bk/bv
        ],
        out_specs=[pl.BlockSpec((1, block_n, C), lambda b, t: (b, t, 0))] * 3,
        compiler_params=pltpu.CompilerParams(
            dimension_semantics=("parallel", "parallel"),            # 2 parallel axes (v7x 2-TC)
            vmem_limit_bytes=_vmem_limit(
                block_n * C * (f32 + 3 * bf16)          # x tile + 3 bf16 outputs
                + 3 * C * C * bf16 + 6 * C * f32        # weights + biases/stats/gamma/beta
                + 2 * block_n * C * f32)),              # live fp32 temps (h + one qkv chunk)
    )(x_bnc, stats, gamma, beta, wq16, wk16, wv16, bqkv)

    # ---------------- pass 2: flash attention + proj + residual ----------------
    nq = N // block_q
    nk = N // block_kv
    # NOTE: kv axis must stay the innermost "arbitrary" grid axis (see _attn_kernel invariant)
    out_bnc = pl.pallas_call(
        _attn_kernel,
        out_shape=jax.ShapeDtypeStruct((B, N, C), jnp.float32),
        grid=(B, nq, nk),
        in_specs=[
            pl.BlockSpec((1, block_q, C), lambda b, qi, ki: (b, qi, 0)),   # x (residual)
            pl.BlockSpec((1, block_q, C), lambda b, qi, ki: (b, qi, 0)),   # q (bf16, scaled)
            pl.BlockSpec((1, block_kv, C), lambda b, qi, ki: (b, ki, 0)),  # k (bf16)
            pl.BlockSpec((1, block_kv, C), lambda b, qi, ki: (b, ki, 0)),  # v (bf16)
            pl.BlockSpec((C, C), lambda b, qi, ki: (0, 0)),                # wp (bf16)
            pl.BlockSpec((1, C), lambda b, qi, ki: (0, 0)),                # bp
        ],
        out_specs=pl.BlockSpec((1, block_q, C), lambda b, qi, ki: (b, qi, 0)),
        scratch_shapes=[
            pltpu.VMEM((block_q, 1), jnp.float32),   # running max m
            pltpu.VMEM((block_q, 1), jnp.float32),   # running sum l
            pltpu.VMEM((block_q, C), jnp.float32),   # unnormalized accumulator
        ],
        compiler_params=pltpu.CompilerParams(
            dimension_semantics=("parallel", "parallel", "arbitrary"),
            vmem_limit_bytes=_vmem_limit(
                block_q * C * (2 * f32 + bf16)          # x + out + q blocks
                + 2 * block_kv * C * bf16               # k + v blocks
                + C * C * bf16 + C * f32                # wp + bp
                + block_q * C * f32 + 2 * block_q * f32  # scratch
                + 2 * block_q * block_kv * f32)),        # s / p temporaries
    )(x_bnc, q, k, v, wp16, bp)

    # (B, N, C) -> NCHW
    return jnp.transpose(out_bnc.reshape(B, H, W, C), (0, 3, 1, 2))


# --------------------------------------------------------------------------------------
# Pure-JAX reference matching the PyTorch forward semantics (fp32 throughout)
# --------------------------------------------------------------------------------------
def reference(x_nchw, params):
    gamma, beta, wq, bq, wk, bk, wv, bv, wp, bp = params
    B, C, H, W = x_nchw.shape
    N = H * W
    G = NUM_GROUPS
    cg = C // G
    x = jnp.transpose(x_nchw, (0, 2, 3, 1)).reshape(B, N, C)

    xg = x.reshape(B, N, G, cg)
    mean = jnp.mean(xg, axis=(1, 3), keepdims=True)
    var = jnp.mean((xg - mean) ** 2, axis=(1, 3), keepdims=True)
    h = ((xg - mean) / jnp.sqrt(var + EPS)).reshape(B, N, C)
    h = h * gamma[0] + beta[0]

    q = h @ wq + bq[0]
    k = h @ wk + bk[0]
    v = h @ wv + bv[0]
    s = jnp.einsum('bic,bjc->bij', q, k) * (int(C) ** -0.5)
    p = jax.nn.softmax(s, axis=2)
    o = jnp.einsum('bij,bjc->bic', p, v)
    o = o @ wp + bp[0]
    out = x + o
    return jnp.transpose(out.reshape(B, H, W, C), (0, 3, 1, 2))


def init_params(key, C):
    ks = jax.random.split(key, 10)
    gamma = 1.0 + 0.1 * jax.random.normal(ks[0], (1, C), jnp.float32)
    beta = 0.1 * jax.random.normal(ks[1], (1, C), jnp.float32)
    # 1x1 conv weights stored as (Cin, Cout) matrices (== torch weight[:, :, 0, 0].T)
    wq = 0.05 * jax.random.normal(ks[2], (C, C), jnp.float32)
    bq = 0.05 * jax.random.normal(ks[3], (1, C), jnp.float32)
    wk = 0.05 * jax.random.normal(ks[4], (C, C), jnp.float32)
    bk = 0.05 * jax.random.normal(ks[5], (1, C), jnp.float32)
    wv = 0.05 * jax.random.normal(ks[6], (C, C), jnp.float32)
    bv = 0.05 * jax.random.normal(ks[7], (1, C), jnp.float32)
    wp = 0.05 * jax.random.normal(ks[8], (C, C), jnp.float32)
    bp = 0.05 * jax.random.normal(ks[9], (1, C), jnp.float32)
    return (gamma, beta, wq, bq, wk, bk, wv, bv, wp, bp)


if __name__ == "__main__":
    # GroupNorm(num_groups=32) requires channels % 32 == 0 -> use C=64, small spatial 8x8.
    B, C, H, W = 2, 64, 8, 8
    key = jax.random.PRNGKey(0)
    kx, kp = jax.random.split(key)
    x = jax.random.normal(kx, (B, C, H, W), jnp.float32)
    params = init_params(kp, C)
    ref = reference(x, params)

    # 1) small blocks so the multi-tile paths (stats accumulation, online softmax across kv,
    #    multiple q tiles) — i.e. the production-size code paths — are actually exercised.
    out = spatial_self_attention(x, params, block_q=32, block_kv=32, block_n=32)
    out = jax.block_until_ready(out)
    assert out.shape == (B, C, H, W)
    assert jnp.allclose(out, ref, rtol=2e-2, atol=2e-2), float(jnp.max(jnp.abs(out - ref)))

    # 2) default (large-block) heuristics — single-tile code paths.
    out2 = spatial_self_attention(x, params)
    out2 = jax.block_until_ready(out2)
    assert jnp.allclose(out2, ref, rtol=2e-2, atol=2e-2), float(jnp.max(jnp.abs(out2 - ref)))

    print("KERNEL_OK")
</pallas_src>

<mosaic_0001>
module attributes {stable_mosaic.version = 11 : i64} {
  func.func @_stats_kernel(%arg0: i32, %arg1: i32, %arg2: memref<1x32x64xf32, #tpu.memory_space<vmem>>, %arg3: memref<64x32xf32, #tpu.memory_space<vmem>>, %arg4: memref<32x64xf32, #tpu.memory_space<vmem>>, %arg5: memref<1x2x64xf32, #tpu.memory_space<vmem>>, %arg6: memref<1x64xf32, #tpu.memory_space<vmem>>, %arg7: memref<1x64xf32, #tpu.memory_space<vmem>>) attributes {dimension_semantics = [#tpu.dimension_semantics<parallel>, #tpu.dimension_semantics<arbitrary>], iteration_bounds = array<i64: 2, 2>, scalar_prefetch = 0 : i64, scratch_operands = 2 : i64, tpu.core_type = #tpu.core_type<tc>, window_params = [{transform_indices = @transform_0, window_bounds = array<i64: 1, 32, 64>}, {pipeline_mode = #tpu.pipeline_mode<synchronous>, transform_indices = @transform_1, window_bounds = array<i64: 64, 32>}, {pipeline_mode = #tpu.pipeline_mode<synchronous>, transform_indices = @transform_2, window_bounds = array<i64: 32, 64>}, {transform_indices = @transform_3, window_bounds = array<i64: 1, 2, 64>}]} {
    %c0 = arith.constant 0 : index
    %c0_0 = arith.constant 0 : index
    %c0_1 = arith.constant 0 : index
    %0 = vector.load %arg2[%c0, %c0_0, %c0_1] : memref<1x32x64xf32, #tpu.memory_space<vmem>>, vector<1x32x64xf32>
    %1 = vector.shape_cast %0 : vector<1x32x64xf32> to vector<32x64xf32>
    %cst = arith.constant dense<0.000000e+00> : vector<64xf32>
    %2 = vector.multi_reduction <add>, %1, %cst [0] : vector<32x64xf32> to vector<64xf32>
    %3 = vector.shape_cast %2 : vector<64xf32> to vector<1x64xf32>
    %4 = arith.mulf %1, %1 : vector<32x64xf32>
    %cst_2 = arith.constant dense<0.000000e+00> : vector<64xf32>
    %5 = vector.multi_reduction <add>, %4, %cst_2 [0] : vector<32x64xf32> to vector<64xf32>
    %6 = vector.shape_cast %5 : vector<64xf32> to vector<1x64xf32>
    %c0_i32 = arith.constant 0 : i32
    %7 = arith.cmpi eq, %arg1, %c0_i32 : i32
    %8 = arith.extui %7 : i1 to i32
    %c0_i32_3 = arith.constant 0 : i32
    %9 = arith.cmpi ne, %8, %c0_i32_3 : i32
    scf.if %9 {
      %c0_7 = arith.constant 0 : index
      %c0_8 = arith.constant 0 : index
      %16 = vector.load %arg6[%c0_7, %c0_8] : memref<1x64xf32, #tpu.memory_space<vmem>>, vector<1x64xf32>
      tpu.vector_store %arg6[%c0_7, %c0_8], %3 {strides = array<i32>} : memref<1x64xf32, #tpu.memory_space<vmem>>, vector<1x64xf32>,
      %c0_9 = arith.constant 0 : index
      %c0_10 = arith.constant 0 : index
      %17 = vector.load %arg7[%c0_9, %c0_10] : memref<1x64xf32, #tpu.memory_space<vmem>>, vector<1x64xf32>
      tpu.vector_store %arg7[%c0_9, %c0_10], %6 {strides = array<i32>} : memref<1x64xf32, #tpu.memory_space<vmem>>, vector<1x64xf32>,
    } else {
    }
    %c0_i32_4 = arith.constant 0 : i32
    %10 = arith.cmpi sgt, %arg1, %c0_i32_4 : i32
    %11 = arith.extui %10 : i1 to i32
    %c0_i32_5 = arith.constant 0 : i32
    %12 = arith.cmpi ne, %11, %c0_i32_5 : i32
    scf.if %12 {
      %c0_7 = arith.constant 0 : index
      %c0_8 = arith.constant 0 : index
      %16 = vector.load %arg6[%c0_7, %c0_8] : memref<1x64xf32, #tpu.memory_space<vmem>>, vector<1x64xf32>
      %17 = arith.addf %16, %3 : vector<1x64xf32>
      %c0_9 = arith.constant 0 : index
      %c0_10 = arith.constant 0 : index
      %18 = vector.load %arg6[%c0_9, %c0_10] : memref<1x64xf32, #tpu.memory_space<vmem>>, vector<1x64xf32>
      tpu.vector_store %arg6[%c0_9, %c0_10], %17 {strides = array<i32>} : memref<1x64xf32, #tpu.memory_space<vmem>>, vector<1x64xf32>,
      %c0_11 = arith.constant 0 : index
      %c0_12 = arith.constant 0 : index
      %19 = vector.load %arg7[%c0_11, %c0_12] : memref<1x64xf32, #tpu.memory_space<vmem>>, vector<1x64xf32>
      %20 = arith.addf %19, %6 : vector<1x64xf32>
      %c0_13 = arith.constant 0 : index
      %c0_14 = arith.constant 0 : index
      %21 = vector.load %arg7[%c0_13, %c0_14] : memref<1x64xf32, #tpu.memory_space<vmem>>, vector<1x64xf32>
      tpu.vector_store %arg7[%c0_13, %c0_14], %20 {strides = array<i32>} : memref<1x64xf32, #tpu.memory_space<vmem>>, vector<1x64xf32>,
    } else {
    }
    %c1_i32 = arith.constant 1 : i32
    %13 = arith.cmpi eq, %arg1, %c1_i32 : i32
    %14 = arith.extui %13 : i1 to i32
    %c0_i32_6 = arith.constant 0 : i32
    %15 = arith.cmpi ne, %14, %c0_i32_6 : i32
    scf.if %15 {
      %c0_7 = arith.constant 0 : index
      %c0_8 = arith.constant 0 : index
      %16 = vector.load %arg6[%c0_7, %c0_8] : memref<1x64xf32, #tpu.memory_space<vmem>>, vector<1x64xf32>
      %c0_9 = arith.constant 0 : index
      %c0_10 = arith.constant 0 : index
      %17 = vector.load %arg7[%c0_9, %c0_10] : memref<1x64xf32, #tpu.memory_space<vmem>>, vector<1x64xf32>
      %18 = tpu.concatenate %16, %17 in 0 : vector<1x64xf32>, vector<1x64xf32> -> vector<2x64xf32>
      %c0_11 = arith.constant 0 : index
      %c0_12 = arith.constant 0 : index
      %19 = vector.load %arg3[%c0_11, %c0_12] : memref<64x32xf32, #tpu.memory_space<vmem>>, vector<64x32xf32>
      %cst_13 = arith.constant dense<0.000000e+00> : vector<2x32xf32>
      %20 = tpu.matmul %18, %19, %cst_13 {dimension_numbers = #tpu.dot_dimension_numbers<[1], [0], [0], [1], [0, 0, 1, 1], [], []>} : vector<2x64xf32>, vector<64x32xf32>, vector<2x32xf32> -> vector<2x32xf32>
      %cst_14 = arith.constant 1.280000e+02 : f32
      %21 = vector.broadcast %cst_14 : f32 to vector<2x32xf32>
      %22 = arith.divf %20, %21 : vector<2x32xf32>
      %c0_15 = arith.constant 0 : index
      %c0_16 = arith.constant 0 : index
      %23 = vector.load %arg4[%c0_15, %c0_16] : memref<32x64xf32, #tpu.memory_space<vmem>>, vector<32x64xf32>
      %cst_17 = arith.constant dense<0.000000e+00> : vector<2x64xf32>
      %24 = tpu.matmul %22, %23, %cst_17 {dimension_numbers = #tpu.dot_dimension_numbers<[1], [0], [0], [1], [0, 0, 1, 1], [], []>} : vector<2x32xf32>, vector<32x64xf32>, vector<2x64xf32> -> vector<2x64xf32>
      %25 = vector.extract_strided_slice %24 {offsets = [0, 0], sizes = [1, 64], strides = [1, 1]} : vector<2x64xf32> to vector<1x64xf32>
      %26 = vector.extract_strided_slice %24 {offsets = [1, 0], sizes = [1, 64], strides = [1, 1]} : vector<2x64xf32> to vector<1x64xf32>
      %27 = arith.mulf %25, %25 : vector<1x64xf32>
      %28 = arith.subf %26, %27 : vector<1x64xf32>
      %cst_18 = arith.constant 0.000000e+00 : f32
      %29 = vector.broadcast %cst_18 : f32 to vector<1x64xf32>
      %30 = arith.maximumf %28, %29 : vector<1x64xf32>
      %cst_19 = arith.constant 9.99999997E-7 : f32
      %31 = vector.broadcast %cst_19 : f32 to vector<1x64xf32>
      %32 = arith.addf %30, %31 : vector<1x64xf32>
      %33 = math.rsqrt %32 : vector<1x64xf32>
      %34 = tpu.concatenate %25, %33 in 0 : vector<1x64xf32>, vector<1x64xf32> -> vector<2x64xf32>
      %c0_20 = arith.constant 0 : index
      %c0_21 = arith.constant 0 : index
      %c0_22 = arith.constant 0 : index
      %35 = vector.load %arg5[%c0_20, %c0_21, %c0_22] : memref<1x2x64xf32, #tpu.memory_space<vmem>>, vector<1x2x64xf32>
      %36 = vector.shape_cast %35 : vector<1x2x64xf32> to vector<2x64xf32>
      %37 = vector.shape_cast %34 : vector<2x64xf32> to vector<1x2x64xf32>
      tpu.vector_store %arg5[%c0_20, %c0_21, %c0_22], %37 {strides = array<i32>} : memref<1x2x64xf32, #tpu.memory_space<vmem>>, vector<1x2x64xf32>,
    } else {
    }
    return
  }
  func.func @transform_0(%arg0: i32, %arg1: i32) -> (i32, i32, i32) {
    %c0_i32 = arith.constant 0 : i32
    %c0_i32_0 = arith.constant 0 : i32
    return %arg0, %arg1, %c0_i32 : i32, i32, i32
  }
  func.func @transform_1(%arg0: i32, %arg1: i32) -> (i32, i32) {
    %c0_i32 = arith.constant 0 : i32
    %c0_i32_0 = arith.constant 0 : i32
    %c0_i32_1 = arith.constant 0 : i32
    return %c0_i32, %c0_i32_0 : i32, i32
  }
  func.func @transform_2(%arg0: i32, %arg1: i32) -> (i32, i32) {
    %c0_i32 = arith.constant 0 : i32
    %c0_i32_0 = arith.constant 0 : i32
    %c0_i32_1 = arith.constant 0 : i32
    return %c0_i32, %c0_i32_0 : i32, i32
  }
  func.func @transform_3(%arg0: i32, %arg1: i32) -> (i32, i32, i32) {
    %c0_i32 = arith.constant 0 : i32
    %c0_i32_0 = arith.constant 0 : i32
    %c0_i32_1 = arith.constant 0 : i32
    return %arg0, %c0_i32, %c0_i32_0 : i32, i32, i32
  }
}

</mosaic_0001>

<bundles_post_ra>
// kernel: tpu_custom_call.1
= control target key start
LH: loop header
LB: loop body
LE: loop exit
PB: predicated region body
PF: predicated region fallthrough
CT: control target
= control target key end

     0   :  { %8 = vsyncpa [#allocation5], 0  ;;  %s1188_s0 = inlined_call_operand.hbm [shape: f32[2,64,64], index: 0, kind: input, shape index: {}]   ;;  %s1189_s1 = inlined_call_operand.vmem [shape: f32[64,32], index: 1, kind: input, shape index: {}]   ;;  %s1190_s2 = inlined_call_operand.vmem [shape: f32[32,64], index: 2, kind: input, shape index: {}]   ;;  %s1191_s3 = inlined_call_operand.hbm [shape: f32[2,2,64], index: 3, kind: output, shape index: {}]  }
   0x1   :  { %10 = vsyncpa [#allocation5 + $0x1], 0 }
   0x2   :  { %11 = vsyncpa [#allocation6], 0 }
   0x3   :  { %13 = vsyncpa [#allocation6 + $0x1], 0  ;;  %s916_s12 = smov 0   ;;  %s918_s13 = smov 0  }
   0x4   :  { %s920_s14 = smov 0   ;;  %s922_s15 = smov 0  }
   0x5   :  { %s924_s16 = smov 0   ;;  %s926_s17 = smov 0  }
   0x6   :  { %s928_s18 = smov 0   ;;  %s930_s19 = smov 0  }
   0x7   :  { %s932_s20 = smov 0   ;;  %s934_s21 = smov 0  }
   0x8   :  { %s936_s22 = smov 0  }
   0x9 LB: > { %s543_s23 = sadd.s32 4294967295, %s887_s22   ;;  %s544_s24 = sadd.s32 4294967294, %s887_s22   ;;  %s887_s22 = sphi %s936_s22, %s19_s22   ;;  %s883_s21 = sphi %s934_s21, %s1217_s21   ;;  %s879_s20 = sphi %s932_s20, %s1216_s20   ;;  %s875_s19 = sphi %s930_s19, %s1215_s19   ;;  %s871_s18 = sphi %s928_s18, %s1214_s18   ;;  %s867_s17 = sphi %s926_s17, %s1213_s17   ;;  %s863_s16 = sphi %s924_s16, %s1212_s16   ;;  %s859_s15 = sphi %s922_s15, %s1211_s15   ;;  %s855_s14 = sphi %s920_s14, %s1210_s14   ;;  %s851_s13 = sphi %s918_s13, %s1209_s13   ;;  %s847_s12 = sphi %s916_s12, %s1208_s12  }
   0xa   : > { %s28_s25 = sadd.s32 1, %s879_s20  ;;  %s31_s26 = sadd.s32 1, %s883_s21 }
   0xb   : > { %p29_p0 = scmp.ge.s32.totalorder %s28_s25, 2  ;;  %s40_s27 = sadd.s32 1, %s867_s17 }
   0xc   : > { %p47_p1 = scmp.ne.s32.totalorder %s867_s17, %s863_s16  ;;  %p48_p2 = scmp.eq.s32.totalorder %s887_s22, 0 }
   0xd   : > { %s1219_s25 = smov (%p29_p0, %s28_s25), 0  ;;  %s1221_s26 = smov (!%p29_p0, %s31_s26), %s883_s21 }
   0xe   : > { %1195 = sst [smem:[#allocation10_spill]] %s1219_s25  ;;  %s36_s28 = ssub.s32 %s879_s20, %s1219_s25 }
   0xf   : > { %p982_p3 = por %p48_p2, %p47_p1  ;;  %p33_p4 = scmp.ge.s32.totalorder %s1221_s26, 2 }
  0x10   : > { %p53_p5 = scmp.ne.s32.totalorder %s863_s16, %s859_s15  ;;  %p54_p6 = scmp.eq.s32.totalorder %s543_s23, 0 }
  0x11   : > { %s108_s30 = sadd.s32 1, %s855_s14  ;;  %s1223_s26 = smov (%p33_p4, %s1221_s26), 0 }
  0x12   : > { %1197 = sst [smem:[#allocation11_spill]] %s1223_s26  ;;  %p990_p7 = por %p54_p6, %p53_p5 }
  0x13   : > { %p118_p8 = scmp.ne.s32.totalorder %s855_s14, %s851_s13  ;;  %s35_s5 = ssub.s32 %s883_s21, %s1223_s26 }
  0x14   : > { %p119_p9 = scmp.eq.s32.totalorder %s543_s23, 3  ;;  %s37_s6 = sor.u32 %s36_s28, %s35_s5 }
  0x15   : > { %p106_p10 = scmp.eq.s32.totalorder %s35_s5, 0  ;;  %p38_p11 = scmp.eq.s32.totalorder %s37_s6, 0 }
  0x16   : > { %p998_p12 = por %p119_p9, %p118_p8  ;;  %p124_p13 = scmp.ne.s32.totalorder %s851_s13, %s847_s12 }
  0x17   : > { %s1003_s8 = scalar_select %p106_p10, %s855_s14, %s108_s30  }
  0x18   : > { %s1199_s7 = scalar_select %p998_p12, 1, 0 }
  0x19   : > { %s1006_s9 = scalar_select %p38_p11, %s867_s17, %s40_s27  }
  0x1a   : > { %p125_p0 = scmp.eq.s32.totalorder %s544_s24, 3  ;;  %p638_p1 = scmp.lt.s32.totalorder %s887_s22, 4 }
  0x1b   : > { %1200 = sst [smem:[#allocation12_spill]] %s1006_s9  ;;  %s151_s11 = sand.u32 1, %s867_s17  }
  0x1c   : > { %p1011_p2 = por %p125_p0, %p124_p13  ;;  %s547_s15 = sshll.u32 %s151_s11, 5 }
  0x1d   : > { %s548_s23 = sshll.u32 %s879_s20, 2  ;;  %s549_s28 = sshll.u32 %s883_s21, 3 }
  0x1e   : > { %s1201_s10 = scalar_select %p1011_p2, 1, 0 }
  0x1f   : > { %s155_s5 = scalar_lea.vmem [#allocation4], %s547_s15  ;;  %s161_s26 = sadd.s32 %s549_s28, %s548_s23 }
  0x20   : > { %s164_s6 = sshll.u32 %s155_s5, 4  ;;  %s550_s30 = sshll.u32 %s161_s26, 7  ;;  %s1018_s6 = int_to_ptr.vmem [resolvable:$true] %s164_s6 }
  0x21   : > { %p1022_p4 = pnand %p638_p1, %p982_p3  ;;  %s1029_s9 = scalar_lea.hbm %s1188_s0, %s550_s30 }
  0x22   : > { %s1031_s15 = scalar_lea.sflag [#allocation5], %s151_s11  ;;  %s735_s23 = scalar_lea.hbm %s1029_s9, 512 }
  0x23   : > { %p736_p5 = scmp.ne.s32.totalorder %s1029_s9, %s735_s23  ;;  %p737_p3 = pneg %p1022_p4 }
  0x24   : > { %s740_s29 = scalar_lea.hbm %s1188_s0, 2048  ;;  %p741_p9 = scmp.lt.u32.totalorder %s1029_s9, %s1188_s0 }
  0x25   : > { %p738_p6 = pnand %p737_p3, %p736_p5  ;;  %p742_p10 = scmp.lt.u32.totalorder %s740_s29, %s735_s23 }
  0x26   : > { %p744_p13 = scmp.lt.u32.totalorder %s735_s23, %s1029_s9 }
  0x27   : > { %p739_p8 = pneg %p738_p6  ;;  %p743_p11 = por %p742_p10, %p741_p9 }
  0x29   : > { %p745_p0 = por %p744_p13, %p743_p11 }
  0x2b   : > { %p746_p1 = pnand %p745_p0, %p739_p8 }
  0x2d   : > { %749 = shalt.err (!%p746_p1)
}
  0x2e   : > { %s750_s11 = scalar_lea.vmem %s1018_s6, 512  ;;  %s889_s30 = smov [#allocation4]  }
  0x2f   : > { %p751_p5 = scmp.ne.s32.totalorder %s1018_s6, %s750_s11  ;;  %s755_s24 = sshll.u32 %s889_s30, 4  ;;  %s756_s24 = int_to_ptr.vmem [resolvable:$false] %s755_s24 }
  0x30   : > { %s757_s26 = scalar_lea.vmem %s756_s24, 1024  ;;  %p758_p12 = scmp.lt.s32.totalorder %s1018_s6, %s756_s24 }
  0x31   : > { %p753_p6 = pnand %p751_p5, %p737_p3  ;;  %p759_p9 = scmp.lt.s32.totalorder %s757_s26, %s750_s11 }
  0x33   : > { %p754_p2 = pneg %p753_p6  ;;  %p760_p10 = por %p759_p9, %p758_p12 }
  0x35   : > { %p761_p11 = pnand %p760_p10, %p754_p2 }
  0x37   : > { %764 = shalt.err (!%p761_p11)
}
  0x38   : > { %s890_s23 = smov 128   ;;  %s891_s25 = smov 8  }
  0x39   : > { %633 = dma.hbm_to_vmem [thread:$0]  (!%p1022_p4), %s1029_s9, 512, %s1018_s6, %s1031_s15, %s890_s23, %s890_s23, %s891_s25  }
  0x3a   : > { %p551_p3 = scmp.ge.s32.totalorder %s887_s22, 1  ;;  %p172_p8 = scmp.lt.s32.totalorder %s887_s22, 5 }
  0x3c   : > { %p173_p13 = pnand %p551_p3, %p172_p8 }
  0x3d   : > { %s178_s29 = sand.u32 (!%p173_p13), 1, %s863_s16  }
  0x3e   : > { %176 = sbr.rel (%p173_p13) target bundleno = 596 (0x254), region = 32  ;;  %s552_s28 = sshll.u32 (!%p173_p13), %s178_s29, 5 }
  0x3f   : > { %s179_s5 = scalar_lea.sflag (!%p173_p13), [#allocation5], %s178_s29  ;;  %s182_s11 = scalar_lea.vmem (!%p173_p13), [#allocation4], %s552_s28 }
  0x45   : > { %838 = dma.done.wait (%p990_p7), %s179_s5, 512  }
  0x46   : > { %840 = vsyncadd (%p990_p7), %s179_s5, 4294966784  ;;  %s202_s30 = sand.u32 1, %s851_s13   ;;  %vm210_vm0 = vcmask 523264   ;;  %v206_v0 = vld [vmem:[%s182_s11] sm:$0xff]  ;;  %v207_v1 = vld [vmem:[%s182_s11 + $0x8] sm:$0xff]  ;;  %p554_p7 = scmp.ne.s32.totalorder %s871_s18, 0 }
  0x47   : > { %s1069_s9 = sshll.u32 %s202_s30, 1  ;;  %v208_v2 = vld [vmem:[%s182_s11 + $0x10] sm:$0xff]  ;;  %v209_v3 = vld [vmem:[%s182_s11 + $0x18] sm:$0xff]  ;;  %v211_v4 = vsel %vm210_vm0, %v206_v0, 0.0  ;;  %v212_v5 = vsel %vm210_vm0, %v207_v1, 0.0  ;;  %v224_v7 = vmul.f32 %v206_v0, %v206_v0  ;;  %v225_v9 = vmul.f32 %v207_v1, %v207_v1 }
  0x48   : > { %v214_v6 = vsel %vm210_vm0, %v208_v2, 0.0  ;;  %v213_v8 = vadd.f32 %v212_v5, %v211_v4  ;;  %v226_v10 = vmul.f32 %v208_v2, %v208_v2  ;;  %v216_v11 = vsel %vm210_vm0, %v209_v3, 0.0  ;;  %s204_s4 = scalar_lea.vmem [#allocation7], %s1069_s9 }
  0x49   : > { %v227_v12 = vmul.f32 %v209_v3, %v209_v3  ;;  %v228_v13 = vsel %vm210_vm0, %v224_v7, 0.0  ;;  %v229_v15 = vsel %vm210_vm0, %v225_v9, 0.0  ;;  %vm245_vm1 = vcmask (!%p554_p7), 516096  }
  0x4a   : > { %v215_v14 = vadd.f32 %v214_v6, %v213_v8  ;;  %v231_v16 = vsel %vm210_vm0, %v226_v10, 0.0  ;;  %v230_v17 = vadd.f32 %v229_v15, %v228_v13 }
  0x4b   : > { %v233_v19 = vsel %vm210_vm0, %v227_v12, 0.0 }
  0x4c   : > { %v217_v18 = vadd.f32 %v216_v11, %v215_v14  ;;  %v232_v20 = vadd.f32 %v231_v16, %v230_v17 }
  0x4e   : > { %v218_v21 = vrot.slane %v217_v18, 4  ;;  %v234_v22 = vadd.f32 %v233_v19, %v232_v20 }
  0x50   : > { %v219_v23 = vadd.f32 %v218_v21, %v217_v18  ;;  %v235_v24 = vrot.slane %v234_v22, 4 }
  0x52   : > { %v220_v25 = vrot.slane %v219_v23, 2  ;;  %v236_v26 = vadd.f32 %v235_v24, %v234_v22 }
  0x54   : > { %v221_v27 = vadd.f32 %v220_v25, %v219_v23  ;;  %v237_v28 = vrot.slane %v236_v26, 2  ;;  %244 = sbr.rel (%p554_p7) target bundleno = 93 (0x5d), region = 40 }
  0x56   : > { %v222_v29 = vrot.slane %v221_v27, 1  ;;  %v238_v30 = vadd.f32 %v237_v28, %v236_v26 }
  0x58   : > { %v223_v31 = vadd.f32 %v222_v29, %v221_v27  ;;  %v239_v32 = vrot.slane %v238_v30, 1 }
  0x5a   : > { %v240_v33 = vadd.f32 %v239_v32, %v238_v30  ;;  %246 = vst.msk [vmem:[#allocation2] sm:$0x1] (!%p554_p7), %vm245_vm1, %v223_v31 }
  0x5c   : > { %247 = vst.msk [vmem:[#allocation3] sm:$0x1] %vm245_vm1, %v240_v33 }
  0x5d PF: > { %p555_p12 = scmp.le.s32.totalorder %s871_s18, 0 }
  0x5e   : > { %vm254_vm2 = vcmask (!%p555_p12), 516096  }
  0x5f   : > { %251 = sbr.rel (%p555_p12) target bundleno = 103 (0x67), region = 44 }
  0x63   : > { %v252_v34 = vld [vmem:[#allocation2] sm:$0x1] (!%p555_p12)  ;;  %v256_v35 = vld [vmem:[#allocation3] sm:$0x1] (!%p555_p12) }
  0x64   : > { %v253_v36 = vadd.f32 (!%p555_p12), %v252_v34, %v223_v31  ;;  %v257_v37 = vadd.f32 (!%p555_p12), %v256_v35, %v240_v33 }
  0x66   : > { %255 = vst.msk [vmem:[#allocation2] sm:$0x1] %vm254_vm2, %v253_v36  ;;  %258 = vst.msk [vmem:[#allocation3] sm:$0x1] %vm254_vm2, %v257_v37 }
  0x67 PF: > { %p556_p2 = scmp.ne.s32.totalorder %s871_s18, 1 }
  0x68   : > { %v273_v38 = vld [vmem:[%s1189_s1] sm:$0xff] (!%p556_p2)  ;;  %v274_v39 = vld [vmem:[%s1189_s1 + $0x8] sm:$0xff] (!%p556_p2)  ;;  %v275_v40 = vld [vmem:[%s1189_s1 + $0x10] sm:$0xff] (!%p556_p2)  ;;  %v892_v41 = vmov (!%p556_p2), 0.0|0.0   ;;  %vm893_vm3 = vmmov (!%p556_p2), 0   ;;  %v894_v44 = vmov (!%p556_p2), 0.0  }
  0x69   : > { %262 = sbr.rel (%p556_p2) target bundleno = 571 (0x23b), region = 48  ;;  %608 = vmatprep.subr.bf16.mxu0 (!%p556_p2), %v892_v41  ;;  %v609_v42 = vpack.c.bf16 (!%p556_p2), %v274_v39, %v273_v38  ;;  %v276_v43 = vld [vmem:[%s1189_s1 + $0x18] sm:$0xff] (!%p556_p2)  ;;  %594 = vmatprep.mubr.msk.f32.mxu0 (!%p556_p2), %vm893_vm3, %v894_v44  ;;  %v356_v46 = vld [vmem:[%s1190_s2] sm:$0xff] (!%p556_p2)  ;;  %v357_v47 = vld [vmem:[%s1190_s2 + $0x8] sm:$0xff] (!%p556_p2)  ;;  %vm271_vm4 = vcmask (!%p556_p2), 1040384   ;;  %vm360_vm5 = vcmask (!%p556_p2), 261120  }
  0x6a   : > { %620 = vmatprep.subr.bf16.mxu1 (!%p556_p2), %v892_v41  ;;  %605 = vmatprep.mubr.msk.f32.mxu1 (!%p556_p2), %vm893_vm3, %v894_v44  ;;  %v612_v45 = vpack.c.bf16 (!%p556_p2), %v276_v43, %v275_v40  ;;  %v277_v48 = vld [vmem:[%s1189_s1 + $0x20] sm:$0xff] (!%p556_p2)  ;;  %v278_v49 = vld [vmem:[%s1189_s1 + $0x28] sm:$0xff] (!%p556_p2)  ;;  %v621_v50 = vpack.c.bf16 (!%p556_p2), %v357_v47, %v356_v46  ;;  %v279_v52 = vld [vmem:[%s1189_s1 + $0x30] sm:$0xff] (!%p556_p2)  ;;  %vm443_vm6 = vcmask (!%p556_p2), 517120  }
  0x6b   : > { %610 = vmatpush3.bf16.msra.mxu0 (!%p556_p2), %v609_v42  ;;  %v615_v51 = vpack.c.bf16 (!%p556_p2), %v278_v49, %v277_v48  ;;  %v280_v53 = vld [vmem:[%s1189_s1 + $0x38] sm:$0xff] (!%p556_p2)  ;;  %v358_v58 = vld [vmem:[%s1190_s2 + $0x10] sm:$0xff] (!%p556_p2) }
  0x6c   : > { %611 = vmatprep.subr.bf16.mxu0 (!%p556_p2), %v892_v41  ;;  %622 = vmatpush3.bf16.msra.mxu1 (!%p556_p2), %v621_v50  ;;  %v618_v54 = vpack.c.bf16 (!%p556_p2), %v280_v53, %v279_v52  ;;  %v359_v59 = vld [vmem:[%s1190_s2 + $0x18] sm:$0xff] (!%p556_p2) }
  0x6d   : > { %623 = vmatprep.subr.bf16.mxu1 (!%p556_p2), %v892_v41  ;;  %v263_v55 = vld [vmem:[#allocation2] sm:$0x1] (!%p556_p2)  ;;  %v557_v56 = vld [vmem:[#allocation3] ss:$0 sm:$0xff] (!%p556_p2)  ;;  %v624_v60 = vpack.c.bf16 (!%p556_p2), %v359_v59, %v358_v58 }
  0x6e   : > { %v272_v57 = vsel (!%p556_p2), %vm271_vm4, %v263_v55, %v557_v56 }
  0x6f   : > { %613 = vmatpush3.bf16.msra.mxu0 (!%p556_p2), %v612_v45 }
  0x70   : > { %614 = vmatprep.subr.bf16.mxu0 %v892_v41  ;;  %625 = vmatpush3.bf16.msra.mxu1 %v624_v60 }
  0x73   : > { %616 = vmatpush3.bf16.msra.mxu0 %v615_v51 }
  0x74   : > { %617 = vmatprep.subr.bf16.mxu0 %v892_v41 }
  0x77   : > { %619 = vmatpush3.bf16.msra.mxu0 %v618_v54 }
  0x7a   : > { %595 = vmatmul.mubr.msk.f32.vlgmr.msra.gmra.mrb[0].mxu0 %vm210_vm0, %v272_v57 }
 0x14d   : > { %v350_v61 = vpop.f32.mrb[0].mxu0 }
 0x14e   : > { %v355_v62 = vmul.f32 0.0078125, %v350_v61  ;;  %v596_v63 = vpop.f32.mrb[1].mxu0 }
 0x150   : > { %606 = vmatmul.mubr.msk.f32.vlgmr.msra.gmra.mrb[0].mxu1 %vm360_vm5, %v355_v62 }
 0x223   : > { %v430_v0 = vpop.f32.mrb[0].mxu1 }
 0x224   : > { %v434_v1 = vmul.f32 %v430_v0, %v430_v0  ;;  %v607_v2 = vpop.f32.mrb[1].mxu1 }
 0x226   : > { %v436_v3 = vrot.slane %v434_v1, 7 }
 0x228   : > { %v438_v4 = vsub.f32 %v430_v0, %v436_v3 }
 0x22a   : > { %v439_v5 = vmax.f32 %v438_v4, 0.0 }
 0x22c   : > { %v440_v6 = vadd.f32 1e-06, %v439_v5 }
 0x22e   : > { %733 = vrsqrt.f32 %v440_v6 }
 0x238   : > { %v734_v7 = vpop.eup %733 }
 0x239   : > { %v442_v8 = vsel %vm271_vm4, %v430_v0, %v734_v7 }
 0x23a   : > { %444 = vst.msk [vmem:[%s204_s4] sm:$0x3] %vm443_vm6, %v442_v8 }
 0x23b PF: > { %s561_s6 = sshll.u32 %s875_s19, 5  ;;  %s459_s26 = sshll.u32 %s204_s4, 4  ;;  %s460_s26 = int_to_ptr.vmem [resolvable:$true] %s459_s26 }
 0x23c   : > { %s1128_s24 = scalar_lea.hbm %s1191_s3, %s561_s6  ;;  %s446_s23 = scalar_lea.sflag [#allocation6], %s202_s30 }
 0x23d   : > { %s765_s25 = scalar_lea.vmem %s460_s26, 32  ;;  %p1203_p0 = scmp.ne.s32.totalorder %s1199_s7, 0 }
 0x23e   : > { %p766_p4 = scmp.ne.s32.totalorder %s460_s26, %s765_s25  ;;  %s895_s29 = smov [#allocation7]  }
 0x23f   : > { %s769_s18 = sshll.u32 %s895_s29, 4  ;;  %s770_s18 = int_to_ptr.vmem [resolvable:$false] %s769_s18 }
 0x240   : > { %p767_p1 = pnand %p766_p4, %p1203_p0  ;;  %s771_s28 = scalar_lea.vmem %s770_s18, 64 }
 0x241   : > { %p772_p6 = scmp.lt.s32.totalorder %s460_s26, %s770_s18  ;;  %p773_p9 = scmp.lt.s32.totalorder %s771_s28, %s765_s25 }
 0x242   : > { %p768_p5 = pneg %p767_p1 }
 0x243   : > { %p774_p10 = por %p773_p9, %p772_p6 }
 0x245   : > { %p775_p11 = pnand %p774_p10, %p768_p5 }
 0x247   : > { %778 = shalt.err (!%p775_p11)
}
 0x248   : > { %s779_s19 = scalar_lea.hbm %s1128_s24, 32  ;;  %s783_s4 = scalar_lea.hbm %s1191_s3, 64 }
 0x249   : > { %p780_p3 = scmp.ne.s32.totalorder %s1128_s24, %s779_s19  ;;  %p784_p7 = scmp.lt.u32.totalorder %s1128_s24, %s1191_s3 }
 0x24a   : > { %p785_p12 = scmp.lt.u32.totalorder %s783_s4, %s779_s19  ;;  %p787_p4 = scmp.lt.u32.totalorder %s779_s19, %s1128_s24 }
 0x24b   : > { %p781_p8 = pnand %p780_p3, %p1203_p0 }
 0x24c   : > { %p786_p2 = por %p785_p12, %p784_p7 }
 0x24d   : > { %p782_p13 = pneg %p781_p8 }
 0x24e   : > { %p788_p1 = por %p787_p4, %p786_p2 }
 0x250   : > { %p789_p5 = pnand %p788_p1, %p782_p13 }
 0x252   : > { %792 = shalt.err (!%p789_p5)
}
 0x253   : > { %628 = dma.vmem_to_hbm [thread:$0]  (%p1203_p0), %s460_s26, 32, %s1128_s24, %s446_s23  }
 0x254 PF: > { %p639_p6 = scmp.ge.s32.totalorder %s887_s22, 2  ;;  %s471_s6 = sand.u32 1, %s847_s12  }
 0x255   : > { %p1204_p9 = scmp.ne.s32.totalorder %s1201_s10, 0  ;;  %s472_s27 = scalar_lea.sflag [#allocation6], %s471_s6 }
 0x257   : > { %p635_p10 = pnand %p639_p6, %p1204_p9 }
 0x259   : > { %842 = dma.done.wait (!%p635_p10), %s472_s27, 32  }
 0x25a   : > { %844 = vsyncadd (!%p635_p10), %s472_s27, 4294967264  ;;  %s19_s22 = sadd.s32 1, %s887_s22   ;;  %s1205_s7 = sld [smem:[#allocation12_spill]] }
 0x25b   : > { %p16_p11 = scmp.ge.s32.totalorder %s19_s22, 6   ;;  %s1206_s24 = sld [smem:[#allocation10_spill]] }
 0x25c   : > { %s1207_s26 = sld [smem:[#allocation11_spill]]  ;;  %s1208_s12 = smov %s851_s13 }
 0x25d   : > { %s1209_s13 = smov %s855_s14  ;;  %s1210_s14 = smov %s1003_s8 }
 0x25e   : > { %s1211_s15 = smov %s863_s16  ;;  %s1212_s16 = smov %s867_s17 }
 0x25f   : > { %s1214_s18 = smov %s879_s20  ;;  %s1215_s19 = smov %s883_s21 }
 0x260   : > { %s1213_s17 = smov %s1205_s7  ;;  %18 = sbr.rel (!%p16_p11) target bundleno = 9 (0x9), region = 89 }
 0x261   : > { %s1216_s20 = smov %s1206_s24 }
 0x262   : > { %s1217_s21 = smov %s1207_s26 }
 0x267   :  { %477 = vsyncpa [#allocation5], 1 }
 0x268   :  { %479 = vsyncpa [#allocation5 + $0x1], 1 }
 0x269   :  { %480 = vsyncpa [#allocation6], 1 }
 0x26a   :  { %482 = vsyncpa [#allocation6 + $0x1], 1 }

</bundles_post_ra>
